<compile_context>
chip_gen: v5e
topology: v5e:2x2
jax: 0.10.0
libtpu: 0.0.40
codegen_flags: <defaults>
</compile_context>

<pallas_src>
import math
import numpy as np
import jax
import jax.numpy as jnp
from jax.experimental import pallas as pl
from jax.experimental.pallas import tpu as pltpu

# ----------------------- problem sizes (small, deterministic) -----------------------
B = 2          # batch
L = 8          # max_session_len
D = 32         # embedding_size (args.hidden_size)
N_ITEMS = 20   # args.item_size
STEP = 1       # args.step


# ----------------------- host-side graph construction (numpy) -----------------------
# Same as the PyTorch module's _get_slice: data-dependent preprocessing, not the
# hot path, so it stays on the host.
def get_slice_np(item_seq):
    mask = (item_seq > 0).astype(np.float32)
    items, A, alias_inputs = [], [], []
    max_n_node = item_seq.shape[1]
    for u_input in item_seq:
        node = np.unique(u_input)
        items.append(node.tolist() + (max_n_node - len(node)) * [0])
        u_A = np.zeros((max_n_node, max_n_node))
        for i in np.arange(len(u_input) - 1):
            if u_input[i + 1] == 0:
                break
            u = np.where(node == u_input[i])[0][0]
            v = np.where(node == u_input[i + 1])[0][0]
            u_A[u][v] = 1
        u_sum_in = np.sum(u_A, 0)
        u_sum_in[np.where(u_sum_in == 0)] = 1
        u_A_in = np.divide(u_A, u_sum_in)
        u_sum_out = np.sum(u_A, 1)
        u_sum_out[np.where(u_sum_out == 0)] = 1
        u_A_out = np.divide(u_A.transpose(), u_sum_out)
        u_A = np.concatenate([u_A_in, u_A_out]).transpose()
        A.append(u_A)
        alias_inputs.append([np.where(node == i)[0][0] for i in u_input])
    return (np.array(alias_inputs, dtype=np.int32),
            np.array(A, dtype=np.float32),
            np.array(items, dtype=np.int32),
            mask)


# ----------------------- fused Pallas kernel (embed + GNN + gathers + readout) ----------------
def srgnn_kernel(graph_ref, items_oh_ref, emb_ref, lm_ref,
                 wdd_ref, w3d_ref, bd_ref, b3_ref, out_ref):
    BL = B * L

    # ---- packed parameters (loaded once, reused across the STEP loop) ----
    w_ein = wdd_ref[0]      # (D, D)   linear_edge_in.weight.T
    w_eout = wdd_ref[1]     # (D, D)   linear_edge_out.weight.T
    w1 = wdd_ref[2]         # (D, D)   linear_one.weight.T
    w2 = wdd_ref[3]         # (D, D)   linear_two.weight.T
    wt_a = wdd_ref[4]       # (D, D)   linear_transform.weight.T[:D]   (acts on `a`)
    wt_h = wdd_ref[5]       # (D, D)   linear_transform.weight.T[D:]   (acts on `ht`)

    w_ih_in = w3d_ref[0]    # (D, 3D)  w_ih.T[:D]  (acts on input_in)
    w_ih_out = w3d_ref[1]   # (D, 3D)  w_ih.T[D:]  (acts on input_out)
    w_hh = w3d_ref[2]       # (D, 3D)  w_hh.T

    bd = bd_ref[...]        # (8, D)
    b_ein, b_eout = bd[0:1], bd[1:2]
    b_iah, b_ioh = bd[2:3], bd[3:4]
    b1, b2 = bd[4:5], bd[5:6]
    w3_row = bd[6:7]        # (1, D)  linear_three.weight row
    bt = bd[7:8]

    b3 = b3_ref[...]        # (2, 3D)
    b_ih, b_hh = b3[0:1], b3[1:2]

    # ---- packed data operands ----
    a_in = graph_ref[0]     # (B, L, L)
    a_out = graph_ref[1]    # (B, L, L)
    alias_oh = graph_ref[2]  # (B, L, L) one-hot alias_inputs
    last_oh = lm_ref[0]     # (B, L, 1) one-hot of (item_seq_len - 1)
    mask3 = lm_ref[1]       # (B, L, 1) padding mask

    # ---- embedding lookup as a one-hot MXU matmul (no HBM round trip) ----
    h = jnp.dot(items_oh_ref[...], emb_ref[...],
                preferred_element_type=jnp.float32)                  # (BL, D)

    # ---- GNN GRU-style cell, dense matmuls on (B*L, D) ----
    def gnn_step(_, h):
        eh_in = (jnp.dot(h, w_ein, preferred_element_type=jnp.float32)
                 + b_ein).reshape(B, L, D)
        eh_out = (jnp.dot(h, w_eout, preferred_element_type=jnp.float32)
                  + b_eout).reshape(B, L, D)
        ii = jnp.einsum('blk,bkd->bld', a_in, eh_in,
                        preferred_element_type=jnp.float32).reshape(BL, D) + b_iah
        io = jnp.einsum('blk,bkd->bld', a_out, eh_out,
                        preferred_element_type=jnp.float32).reshape(BL, D) + b_ioh
        # cat([ii, io]) @ w_ih.T  ==  ii @ w_ih_in + io @ w_ih_out  (no concat)
        gi = (jnp.dot(ii, w_ih_in, preferred_element_type=jnp.float32)
              + jnp.dot(io, w_ih_out, preferred_element_type=jnp.float32) + b_ih)
        gh = jnp.dot(h, w_hh, preferred_element_type=jnp.float32) + b_hh
        i_r, i_i, i_n = gi[:, :D], gi[:, D:2 * D], gi[:, 2 * D:]
        h_r, h_i, h_n = gh[:, :D], gh[:, D:2 * D], gh[:, 2 * D:]
        reset_gate = jax.nn.sigmoid(i_r + h_r)
        input_gate = jax.nn.sigmoid(i_i + h_i)
        new_gate = jnp.tanh(i_n + reset_gate * h_n)
        return (1.0 - input_gate) * h + input_gate * new_gate

    h = jax.lax.fori_loop(0, STEP, gnn_step, h, unroll=True)
    h_b = h.reshape(B, L, D)

    # ---- in-kernel gathers via one-hot matmul / select-sum ----
    seq_hidden = jnp.einsum('blk,bkd->bld', alias_oh, h_b,
                            preferred_element_type=jnp.float32)          # (B, L, D)
    ht = jnp.sum(last_oh * seq_hidden, axis=1)                            # (B, D)

    # ---- attention readout ----
    q1 = jnp.dot(ht, w1, preferred_element_type=jnp.float32) + b1         # (B, D)
    q2 = (jnp.dot(seq_hidden.reshape(BL, D), w2,
                  preferred_element_type=jnp.float32) + b2).reshape(B, L, D)
    s = jax.nn.sigmoid(q1[:, None, :] + q2)                               # (B, L, D)
    # linear_three (D x 1): broadcast-multiply + lane reduce instead of a width-1 MXU pass
    alpha = jnp.sum(s * w3_row, axis=-1, keepdims=True)                   # (B, L, 1)
    a = jnp.sum(alpha * mask3 * seq_hidden, axis=1)                       # (B, D)

    # cat([a, ht]) @ wt.T  ==  a @ wt_a + ht @ wt_h  (no concat)
    out_ref[...] = (jnp.dot(a, wt_a, preferred_element_type=jnp.float32)
                    + jnp.dot(ht, wt_h, preferred_element_type=jnp.float32) + bt)


# ----------------------- full SRGNN.forward (Pallas path) -----------------------
def srgnn_forward(item_seq_np, p):
    item_seq_len = (item_seq_np != 0).sum(1).astype(np.int32)
    alias_inputs, A, items, mask = get_slice_np(item_seq_np)

    # host-side layout prep (free preprocessing, same spirit as _get_slice)
    A_in = np.ascontiguousarray(A[:, :, :L])                       # (B, L, L)
    A_out = np.ascontiguousarray(A[:, :, L:2 * L])                 # (B, L, L)
    alias_oh = np.zeros((B, L, L), np.float32)
    alias_oh[np.arange(B)[:, None], np.arange(L)[None, :], alias_inputs] = 1.0
    graph = np.stack([A_in, A_out, alias_oh]).astype(np.float32)   # (3, B, L, L)

    last_oh = np.zeros((B, L, 1), np.float32)
    last_oh[np.arange(B), item_seq_len - 1, 0] = 1.0
    mask3 = mask[:, :, None].astype(np.float32)                    # (B, L, 1)
    lm = np.stack([last_oh, mask3])                                # (2, B, L, 1)

    # one-hot item ids: embedding lookup becomes an MXU matmul inside the kernel
    # TODO(synk): for a production-size vocabulary, keep the table gather outside
    # the kernel (or use a DMA gather) instead of a one-hot matmul.
    items_oh = np.zeros((B * L, N_ITEMS), np.float32)
    items_oh[np.arange(B * L), items.reshape(-1)] = 1.0

    # pack the many tiny parameters into 4 contiguous slabs
    wdd = jnp.stack([p["w_ein"].T, p["w_eout"].T, p["w1"].T, p["w2"].T,
                     p["wt"].T[:D], p["wt"].T[D:]])                # (6, D, D)
    w3d = jnp.stack([p["w_ih"].T[:D], p["w_ih"].T[D:], p["w_hh"].T])  # (3, D, 3D)
    bd = jnp.stack([p["b_ein"], p["b_eout"], p["b_iah"], p["b_ioh"],
                    p["b1"], p["b2"], p["w3"][0], p["bt"]])        # (8, D)
    b3 = jnp.stack([p["b_ih"], p["b_hh"]])                         # (2, 3D)

    vmem = pl.BlockSpec(memory_space=pltpu.MemorySpace.VMEM)
    return pl.pallas_call(
        srgnn_kernel,
        out_shape=jax.ShapeDtypeStruct((B, D), jnp.float32),
        in_specs=[vmem] * 8,
        out_specs=vmem,
    )(jnp.asarray(graph), jnp.asarray(items_oh), p["emb"], jnp.asarray(lm),
      wdd, w3d, bd, b3)


# ----------------------- pure-JAX reference (for validation) -----------------------
def srgnn_reference(item_seq_np, p):
    item_seq_len = (item_seq_np != 0).sum(1)
    alias_inputs, A, items, mask = get_slice_np(item_seq_np)
    A = jnp.asarray(A)
    hidden = p["emb"][jnp.asarray(items)]
    for _ in range(STEP):
        eh_in = hidden @ p["w_ein"].T + p["b_ein"]
        eh_out = hidden @ p["w_eout"].T + p["b_eout"]
        input_in = jnp.matmul(A[:, :, :L], eh_in) + p["b_iah"]
        input_out = jnp.matmul(A[:, :, L:2 * L], eh_out) + p["b_ioh"]
        inputs = jnp.concatenate([input_in, input_out], axis=2)
        gi = inputs @ p["w_ih"].T + p["b_ih"]
        gh = hidden @ p["w_hh"].T + p["b_hh"]
        i_r, i_i, i_n = jnp.split(gi, 3, axis=2)
        h_r, h_i, h_n = jnp.split(gh, 3, axis=2)
        rg = jax.nn.sigmoid(i_r + h_r)
        ig = jax.nn.sigmoid(i_i + h_i)
        ng = jnp.tanh(i_n + rg * h_n)
        hidden = (1 - ig) * hidden + ig * ng
    alias = jnp.asarray(alias_inputs)
    seq_hidden = jnp.take_along_axis(hidden, alias[:, :, None], axis=1)
    ht = seq_hidden[jnp.arange(B), jnp.asarray(item_seq_len) - 1]
    q1 = (ht @ p["w1"].T + p["b1"])[:, None, :]
    q2 = seq_hidden @ p["w2"].T + p["b2"]
    alpha = jax.nn.sigmoid(q1 + q2) @ p["w3"].T
    a = jnp.sum(alpha * seq_hidden * jnp.asarray(mask)[:, :, None], axis=1)
    return jnp.concatenate([a, ht], axis=1) @ p["wt"].T + p["bt"]


# ----------------------- deterministic parameter init -----------------------
def init_params(key):
    stdv = 1.0 / math.sqrt(D)
    names_shapes = [
        ("emb", (N_ITEMS, D)),
        ("w_ih", (3 * D, 2 * D)), ("w_hh", (3 * D, D)),
        ("b_ih", (3 * D,)), ("b_hh", (3 * D,)),
        ("b_iah", (D,)), ("b_ioh", (D,)),
        ("w_ein", (D, D)), ("b_ein", (D,)),
        ("w_eout", (D, D)), ("b_eout", (D,)),
        ("w1", (D, D)), ("b1", (D,)),
        ("w2", (D, D)), ("b2", (D,)),
        ("w3", (1, D)),
        ("wt", (D, 2 * D)), ("bt", (D,)),
    ]
    keys = jax.random.split(key, len(names_shapes))
    return {n: jax.random.uniform(k, s, jnp.float32, -stdv, stdv)
            for (n, s), k in zip(names_shapes, keys)}


if __name__ == "__main__":
    key = jax.random.PRNGKey(0)
    k_seq, k_par = jax.random.split(key)
    params = init_params(k_par)

    # deterministic item sequences with trailing padding (0 = pad)
    seq = np.array(jax.random.randint(k_seq, (B, L), 1, N_ITEMS))
    lengths = [5, 7]
    for b in range(B):
        seq[b, lengths[b]:] = 0
    item_seq = seq.astype(np.int64)

    out = srgnn_forward(item_seq, params)
    out = jax.block_until_ready(out)

    ref = jax.block_until_ready(srgnn_reference(item_seq, params))
    np.testing.assert_allclose(np.asarray(out), np.asarray(ref), rtol=1e-4, atol=1e-5)

    print("KERNEL_OK")
</pallas_src>

<mosaic_0001>
module attributes {stable_mosaic.version = 11 : i64} {
  func.func @srgnn_kernel(%arg0: memref<3x2x8x8xf32, #tpu.memory_space<vmem>>, %arg1: memref<16x20xf32, #tpu.memory_space<vmem>>, %arg2: memref<20x32xf32, #tpu.memory_space<vmem>>, %arg3: memref<2x2x8x1xf32, #tpu.memory_space<vmem>>, %arg4: memref<6x32x32xf32, #tpu.memory_space<vmem>>, %arg5: memref<3x32x96xf32, #tpu.memory_space<vmem>>, %arg6: memref<8x32xf32, #tpu.memory_space<vmem>>, %arg7: memref<2x96xf32, #tpu.memory_space<vmem>>, %arg8: memref<2x32xf32, #tpu.memory_space<vmem>>) attributes {dimension_semantics = [], scalar_prefetch = 0 : i64, scratch_operands = 0 : i64, tpu.core_type = #tpu.core_type<tc>} {
    %c0 = arith.constant 0 : index
    %c0_0 = arith.constant 0 : index
    %c0_1 = arith.constant 0 : index
    %0 = vector.load %arg4[%c0, %c0_0, %c0_1] : memref<6x32x32xf32, #tpu.memory_space<vmem>>, vector<1x32x32xf32>
    %1 = vector.shape_cast %0 : vector<1x32x32xf32> to vector<32x32xf32>
    %c1 = arith.constant 1 : index
    %c0_2 = arith.constant 0 : index
    %c0_3 = arith.constant 0 : index
    %2 = vector.load %arg4[%c1, %c0_2, %c0_3] : memref<6x32x32xf32, #tpu.memory_space<vmem>>, vector<1x32x32xf32>
    %3 = vector.shape_cast %2 : vector<1x32x32xf32> to vector<32x32xf32>
    %c2 = arith.constant 2 : index
    %c0_4 = arith.constant 0 : index
    %c0_5 = arith.constant 0 : index
    %4 = vector.load %arg4[%c2, %c0_4, %c0_5] : memref<6x32x32xf32, #tpu.memory_space<vmem>>, vector<1x32x32xf32>
    %5 = vector.shape_cast %4 : vector<1x32x32xf32> to vector<32x32xf32>
    %c3 = arith.constant 3 : index
    %c0_6 = arith.constant 0 : index
    %c0_7 = arith.constant 0 : index
    %6 = vector.load %arg4[%c3, %c0_6, %c0_7] : memref<6x32x32xf32, #tpu.memory_space<vmem>>, vector<1x32x32xf32>
    %7 = vector.shape_cast %6 : vector<1x32x32xf32> to vector<32x32xf32>
    %c4 = arith.constant 4 : index
    %c0_8 = arith.constant 0 : index
    %c0_9 = arith.constant 0 : index
    %8 = vector.load %arg4[%c4, %c0_8, %c0_9] : memref<6x32x32xf32, #tpu.memory_space<vmem>>, vector<1x32x32xf32>
    %9 = vector.shape_cast %8 : vector<1x32x32xf32> to vector<32x32xf32>
    %c5 = arith.constant 5 : index
    %c0_10 = arith.constant 0 : index
    %c0_11 = arith.constant 0 : index
    %10 = vector.load %arg4[%c5, %c0_10, %c0_11] : memref<6x32x32xf32, #tpu.memory_space<vmem>>, vector<1x32x32xf32>
    %11 = vector.shape_cast %10 : vector<1x32x32xf32> to vector<32x32xf32>
    %c0_12 = arith.constant 0 : index
    %c0_13 = arith.constant 0 : index
    %c0_14 = arith.constant 0 : index
    %12 = vector.load %arg5[%c0_12, %c0_13, %c0_14] : memref<3x32x96xf32, #tpu.memory_space<vmem>>, vector<1x32x96xf32>
    %13 = vector.shape_cast %12 : vector<1x32x96xf32> to vector<32x96xf32>
    %c1_15 = arith.constant 1 : index
    %c0_16 = arith.constant 0 : index
    %c0_17 = arith.constant 0 : index
    %14 = vector.load %arg5[%c1_15, %c0_16, %c0_17] : memref<3x32x96xf32, #tpu.memory_space<vmem>>, vector<1x32x96xf32>
    %15 = vector.shape_cast %14 : vector<1x32x96xf32> to vector<32x96xf32>
    %c2_18 = arith.constant 2 : index
    %c0_19 = arith.constant 0 : index
    %c0_20 = arith.constant 0 : index
    %16 = vector.load %arg5[%c2_18, %c0_19, %c0_20] : memref<3x32x96xf32, #tpu.memory_space<vmem>>, vector<1x32x96xf32>
    %17 = vector.shape_cast %16 : vector<1x32x96xf32> to vector<32x96xf32>
    %c0_21 = arith.constant 0 : index
    %c0_22 = arith.constant 0 : index
    %18 = vector.load %arg6[%c0_21, %c0_22] : memref<8x32xf32, #tpu.memory_space<vmem>>, vector<8x32xf32>
    %19 = vector.extract_strided_slice %18 {offsets = [0, 0], sizes = [1, 32], strides = [1, 1]} : vector<8x32xf32> to vector<1x32xf32>
    %20 = vector.extract_strided_slice %18 {offsets = [1, 0], sizes = [1, 32], strides = [1, 1]} : vector<8x32xf32> to vector<1x32xf32>
    %21 = vector.extract_strided_slice %18 {offsets = [2, 0], sizes = [1, 32], strides = [1, 1]} : vector<8x32xf32> to vector<1x32xf32>
    %22 = vector.extract_strided_slice %18 {offsets = [3, 0], sizes = [1, 32], strides = [1, 1]} : vector<8x32xf32> to vector<1x32xf32>
    %23 = vector.extract_strided_slice %18 {offsets = [4, 0], sizes = [1, 32], strides = [1, 1]} : vector<8x32xf32> to vector<1x32xf32>
    %24 = vector.extract_strided_slice %18 {offsets = [5, 0], sizes = [1, 32], strides = [1, 1]} : vector<8x32xf32> to vector<1x32xf32>
    %25 = vector.extract_strided_slice %18 {offsets = [6, 0], sizes = [1, 32], strides = [1, 1]} : vector<8x32xf32> to vector<1x32xf32>
    %26 = vector.extract_strided_slice %18 {offsets = [7, 0], sizes = [1, 32], strides = [1, 1]} : vector<8x32xf32> to vector<1x32xf32>
    %c0_23 = arith.constant 0 : index
    %c0_24 = arith.constant 0 : index
    %27 = vector.load %arg7[%c0_23, %c0_24] : memref<2x96xf32, #tpu.memory_space<vmem>>, vector<2x96xf32>
    %28 = vector.extract_strided_slice %27 {offsets = [0, 0], sizes = [1, 96], strides = [1, 1]} : vector<2x96xf32> to vector<1x96xf32>
    %29 = vector.extract_strided_slice %27 {offsets = [1, 0], sizes = [1, 96], strides = [1, 1]} : vector<2x96xf32> to vector<1x96xf32>
    %c0_25 = arith.constant 0 : index
    %c0_26 = arith.constant 0 : index
    %c0_27 = arith.constant 0 : index
    %c0_28 = arith.constant 0 : index
    %30 = vector.load %arg0[%c0_25, %c0_26, %c0_27, %c0_28] : memref<3x2x8x8xf32, #tpu.memory_space<vmem>>, vector<1x2x8x8xf32>
    %31 = vector.shape_cast %30 : vector<1x2x8x8xf32> to vector<2x8x8xf32>
    %c1_29 = arith.constant 1 : index
    %c0_30 = arith.constant 0 : index
    %c0_31 = arith.constant 0 : index
    %c0_32 = arith.constant 0 : index
    %32 = vector.load %arg0[%c1_29, %c0_30, %c0_31, %c0_32] : memref<3x2x8x8xf32, #tpu.memory_space<vmem>>, vector<1x2x8x8xf32>
    %33 = vector.shape_cast %32 : vector<1x2x8x8xf32> to vector<2x8x8xf32>
    %c2_33 = arith.constant 2 : index
    %c0_34 = arith.constant 0 : index
    %c0_35 = arith.constant 0 : index
    %c0_36 = arith.constant 0 : index
    %34 = vector.load %arg0[%c2_33, %c0_34, %c0_35, %c0_36] : memref<3x2x8x8xf32, #tpu.memory_space<vmem>>, vector<1x2x8x8xf32>
    %35 = vector.shape_cast %34 : vector<1x2x8x8xf32> to vector<2x8x8xf32>
    %c0_37 = arith.constant 0 : index
    %c0_38 = arith.constant 0 : index
    %c0_39 = arith.constant 0 : index
    %c0_40 = arith.constant 0 : index
    %36 = vector.load %arg3[%c0_37, %c0_38, %c0_39, %c0_40] : memref<2x2x8x1xf32, #tpu.memory_space<vmem>>, vector<1x2x8x1xf32>
    %37 = vector.shape_cast %36 : vector<1x2x8x1xf32> to vector<2x8x1xf32>
    %c1_41 = arith.constant 1 : index
    %c0_42 = arith.constant 0 : index
    %c0_43 = arith.constant 0 : index
    %c0_44 = arith.constant 0 : index
    %38 = vector.load %arg3[%c1_41, %c0_42, %c0_43, %c0_44] : memref<2x2x8x1xf32, #tpu.memory_space<vmem>>, vector<1x2x8x1xf32>
    %39 = vector.shape_cast %38 : vector<1x2x8x1xf32> to vector<2x8x1xf32>
    %c0_45 = arith.constant 0 : index
    %c0_46 = arith.constant 0 : index
    %40 = vector.load %arg1[%c0_45, %c0_46] : memref<16x20xf32, #tpu.memory_space<vmem>>, vector<16x20xf32>
    %c0_47 = arith.constant 0 : index
    %c0_48 = arith.constant 0 : index
    %41 = vector.load %arg2[%c0_47, %c0_48] : memref<20x32xf32, #tpu.memory_space<vmem>>, vector<20x32xf32>
    %cst = arith.constant dense<0.000000e+00> : vector<16x32xf32>
    %42 = tpu.matmul %40, %41, %cst {dimension_numbers = #tpu.dot_dimension_numbers<[1], [0], [0], [1], [0, 0, 1, 1], [], []>} : vector<16x20xf32>, vector<20x32xf32>, vector<16x32xf32> -> vector<16x32xf32>
    %c0_i32 = arith.constant 0 : i32
    %cst_49 = arith.constant dense<0.000000e+00> : vector<16x32xf32>
    %43 = tpu.matmul %42, %1, %cst_49 {dimension_numbers = #tpu.dot_dimension_numbers<[1], [0], [0], [1], [0, 0, 1, 1], [], []>} : vector<16x32xf32>, vector<32x32xf32>, vector<16x32xf32> -> vector<16x32xf32>
    %44 = vector.broadcast %19 : vector<1x32xf32> to vector<16x32xf32>
    %45 = arith.addf %43, %44 : vector<16x32xf32>
    %46 = vector.shape_cast %45 : vector<16x32xf32> to vector<2x8x32xf32>
    %cst_50 = arith.constant dense<0.000000e+00> : vector<16x32xf32>
    %47 = tpu.matmul %42, %3, %cst_50 {dimension_numbers = #tpu.dot_dimension_numbers<[1], [0], [0], [1], [0, 0, 1, 1], [], []>} : vector<16x32xf32>, vector<32x32xf32>, vector<16x32xf32> -> vector<16x32xf32>
    %48 = vector.broadcast %20 : vector<1x32xf32> to vector<16x32xf32>
    %49 = arith.addf %47, %48 : vector<16x32xf32>
    %50 = vector.shape_cast %49 : vector<16x32xf32> to vector<2x8x32xf32>
    "tpu.trace_start"() <{level = 10 : i32, message = "blk,bkd->bld"}> : () -> ()
    %cst_51 = arith.constant dense<0.000000e+00> : vector<2x8x32xf32>
    %51 = tpu.matmul %31, %46, %cst_51 {dimension_numbers = #tpu.dot_dimension_numbers<[2], [1], [1], [2], [0, 0, 0, 1, 1, 2], [0], [0]>} : vector<2x8x8xf32>, vector<2x8x32xf32>, vector<2x8x32xf32> -> vector<2x8x32xf32>
    "tpu.trace_stop"() : () -> ()
    %52 = vector.shape_cast %51 : vector<2x8x32xf32> to vector<16x32xf32>
    %53 = vector.broadcast %21 : vector<1x32xf32> to vector<16x32xf32>
    %54 = arith.addf %52, %53 : vector<16x32xf32>
    "tpu.trace_start"() <{level = 10 : i32, message = "blk,bkd->bld"}> : () -> ()
    %cst_52 = arith.constant dense<0.000000e+00> : vector<2x8x32xf32>
    %55 = tpu.matmul %33, %50, %cst_52 {dimension_numbers = #tpu.dot_dimension_numbers<[2], [1], [1], [2], [0, 0, 0, 1, 1, 2], [0], [0]>} : vector<2x8x8xf32>, vector<2x8x32xf32>, vector<2x8x32xf32> -> vector<2x8x32xf32>
    "tpu.trace_stop"() : () -> ()
    %56 = vector.shape_cast %55 : vector<2x8x32xf32> to vector<16x32xf32>
    %57 = vector.broadcast %22 : vector<1x32xf32> to vector<16x32xf32>
    %58 = arith.addf %56, %57 : vector<16x32xf32>
    %cst_53 = arith.constant dense<0.000000e+00> : vector<16x96xf32>
    %59 = tpu.matmul %54, %13, %cst_53 {dimension_numbers = #tpu.dot_dimension_numbers<[1], [0], [0], [1], [0, 0, 1, 1], [], []>} : vector<16x32xf32>, vector<32x96xf32>, vector<16x96xf32> -> vector<16x96xf32>
    %cst_54 = arith.constant dense<0.000000e+00> : vector<16x96xf32>
    %60 = tpu.matmul %58, %15, %cst_54 {dimension_numbers = #tpu.dot_dimension_numbers<[1], [0], [0], [1], [0, 0, 1, 1], [], []>} : vector<16x32xf32>, vector<32x96xf32>, vector<16x96xf32> -> vector<16x96xf32>
    %61 = arith.addf %59, %60 : vector<16x96xf32>
    %62 = vector.broadcast %28 : vector<1x96xf32> to vector<16x96xf32>
    %63 = arith.addf %61, %62 : vector<16x96xf32>
    %cst_55 = arith.constant dense<0.000000e+00> : vector<16x96xf32>
    %64 = tpu.matmul %42, %17, %cst_55 {dimension_numbers = #tpu.dot_dimension_numbers<[1], [0], [0], [1], [0, 0, 1, 1], [], []>} : vector<16x32xf32>, vector<32x96xf32>, vector<16x96xf32> -> vector<16x96xf32>
    %65 = vector.broadcast %29 : vector<1x96xf32> to vector<16x96xf32>
    %66 = arith.addf %64, %65 : vector<16x96xf32>
    %67 = vector.extract_strided_slice %63 {offsets = [0, 0], sizes = [16, 32], strides = [1, 1]} : vector<16x96xf32> to vector<16x32xf32>
    %68 = vector.extract_strided_slice %63 {offsets = [0, 32], sizes = [16, 32], strides = [1, 1]} : vector<16x96xf32> to vector<16x32xf32>
    %69 = vector.extract_strided_slice %63 {offsets = [0, 64], sizes = [16, 32], strides = [1, 1]} : vector<16x96xf32> to vector<16x32xf32>
    %70 = vector.extract_strided_slice %66 {offsets = [0, 0], sizes = [16, 32], strides = [1, 1]} : vector<16x96xf32> to vector<16x32xf32>
    %71 = vector.extract_strided_slice %66 {offsets = [0, 32], sizes = [16, 32], strides = [1, 1]} : vector<16x96xf32> to vector<16x32xf32>
    %72 = vector.extract_strided_slice %66 {offsets = [0, 64], sizes = [16, 32], strides = [1, 1]} : vector<16x96xf32> to vector<16x32xf32>
    %73 = arith.addf %67, %70 : vector<16x32xf32>
    %74 = arith.negf %73 : vector<16x32xf32>
    %75 = math.exp %74 : vector<16x32xf32>
    %cst_56 = arith.constant 1.000000e+00 : f32
    %76 = vector.broadcast %cst_56 : f32 to vector<16x32xf32>
    %77 = arith.addf %76, %75 : vector<16x32xf32>
    %78 = arith.divf %76, %77 : vector<16x32xf32>
    %79 = arith.addf %68, %71 : vector<16x32xf32>
    %80 = arith.negf %79 : vector<16x32xf32>
    %81 = math.exp %80 : vector<16x32xf32>
    %cst_57 = arith.constant 1.000000e+00 : f32
    %82 = vector.broadcast %cst_57 : f32 to vector<16x32xf32>
    %83 = arith.addf %82, %81 : vector<16x32xf32>
    %84 = arith.divf %82, %83 : vector<16x32xf32>
    %85 = arith.mulf %78, %72 : vector<16x32xf32>
    %86 = arith.addf %69, %85 : vector<16x32xf32>
    %87 = math.tanh %86 : vector<16x32xf32>
    %cst_58 = arith.constant 1.000000e+00 : f32
    %88 = vector.broadcast %cst_58 : f32 to vector<16x32xf32>
    %89 = arith.subf %88, %84 : vector<16x32xf32>
    %90 = arith.mulf %89, %42 : vector<16x32xf32>
    %91 = arith.mulf %84, %87 : vector<16x32xf32>
    %92 = arith.addf %90, %91 : vector<16x32xf32>
    %93 = vector.shape_cast %92 : vector<16x32xf32> to vector<2x8x32xf32>
    "tpu.trace_start"() <{level = 10 : i32, message = "blk,bkd->bld"}> : () -> ()
    %cst_59 = arith.constant dense<0.000000e+00> : vector<2x8x32xf32>
    %94 = tpu.matmul %35, %93, %cst_59 {dimension_numbers = #tpu.dot_dimension_numbers<[2], [1], [1], [2], [0, 0, 0, 1, 1, 2], [0], [0]>} : vector<2x8x8xf32>, vector<2x8x32xf32>, vector<2x8x32xf32> -> vector<2x8x32xf32>
    "tpu.trace_stop"() : () -> ()
    %95 = vector.broadcast %37 : vector<2x8x1xf32> to vector<2x8x32xf32>
    %96 = arith.mulf %95, %94 : vector<2x8x32xf32>
    %cst_60 = arith.constant dense<0.000000e+00> : vector<2x32xf32>
    %97 = vector.multi_reduction <add>, %96, %cst_60 [1] : vector<2x8x32xf32> to vector<2x32xf32>
    %cst_61 = arith.constant dense<0.000000e+00> : vector<2x32xf32>
    %98 = tpu.matmul %97, %5, %cst_61 {dimension_numbers = #tpu.dot_dimension_numbers<[1], [0], [0], [1], [0, 0, 1, 1], [], []>} : vector<2x32xf32>, vector<32x32xf32>, vector<2x32xf32> -> vector<2x32xf32>
    %99 = vector.broadcast %23 : vector<1x32xf32> to vector<2x32xf32>
    %100 = arith.addf %98, %99 : vector<2x32xf32>
    %101 = vector.shape_cast %94 : vector<2x8x32xf32> to vector<16x32xf32>
    %cst_62 = arith.constant dense<0.000000e+00> : vector<16x32xf32>
    %102 = tpu.matmul %101, %7, %cst_62 {dimension_numbers = #tpu.dot_dimension_numbers<[1], [0], [0], [1], [0, 0, 1, 1], [], []>} : vector<16x32xf32>, vector<32x32xf32>, vector<16x32xf32> -> vector<16x32xf32>
    %103 = vector.broadcast %24 : vector<1x32xf32> to vector<16x32xf32>
    %104 = arith.addf %102, %103 : vector<16x32xf32>
    %105 = vector.shape_cast %104 : vector<16x32xf32> to vector<2x8x32xf32>
    %106 = vector.shape_cast %100 : vector<2x32xf32> to vector<2x1x32xf32>
    %107 = vector.broadcast %106 : vector<2x1x32xf32> to vector<2x8x32xf32>
    %108 = arith.addf %107, %105 : vector<2x8x32xf32>
    %109 = arith.negf %108 : vector<2x8x32xf32>
    %110 = math.exp %109 : vector<2x8x32xf32>
    %cst_63 = arith.constant 1.000000e+00 : f32
    %111 = vector.broadcast %cst_63 : f32 to vector<2x8x32xf32>
    %112 = arith.addf %111, %110 : vector<2x8x32xf32>
    %113 = arith.divf %111, %112 : vector<2x8x32xf32>
    %114 = vector.shape_cast %25 : vector<1x32xf32> to vector<1x1x32xf32>
    %115 = vector.broadcast %114 : vector<1x1x32xf32> to vector<2x8x32xf32>
    %116 = arith.mulf %113, %115 : vector<2x8x32xf32>
    %cst_64 = arith.constant dense<0.000000e+00> : vector<2x8xf32>
    %117 = vector.multi_reduction <add>, %116, %cst_64 [2] : vector<2x8x32xf32> to vector<2x8xf32>
    %118 = vector.shape_cast %117 : vector<2x8xf32> to vector<2x8x1xf32>
    %119 = arith.mulf %118, %39 : vector<2x8x1xf32>
    %120 = vector.broadcast %119 : vector<2x8x1xf32> to vector<2x8x32xf32>
    %121 = arith.mulf %120, %94 : vector<2x8x32xf32>
    %cst_65 = arith.constant dense<0.000000e+00> : vector<2x32xf32>
    %122 = vector.multi_reduction <add>, %121, %cst_65 [1] : vector<2x8x32xf32> to vector<2x32xf32>
    %cst_66 = arith.constant dense<0.000000e+00> : vector<2x32xf32>
    %123 = tpu.matmul %122, %9, %cst_66 {dimension_numbers = #tpu.dot_dimension_numbers<[1], [0], [0], [1], [0, 0, 1, 1], [], []>} : vector<2x32xf32>, vector<32x32xf32>, vector<2x32xf32> -> vector<2x32xf32>
    %cst_67 = arith.constant dense<0.000000e+00> : vector<2x32xf32>
    %124 = tpu.matmul %97, %11, %cst_67 {dimension_numbers = #tpu.dot_dimension_numbers<[1], [0], [0], [1], [0, 0, 1, 1], [], []>} : vector<2x32xf32>, vector<32x32xf32>, vector<2x32xf32> -> vector<2x32xf32>
    %125 = arith.addf %123, %124 : vector<2x32xf32>
    %126 = vector.broadcast %26 : vector<1x32xf32> to vector<2x32xf32>
    %127 = arith.addf %125, %126 : vector<2x32xf32>
    %c0_68 = arith.constant 0 : index
    %c0_69 = arith.constant 0 : index
    %128 = vector.load %arg8[%c0_68, %c0_69] : memref<2x32xf32, #tpu.memory_space<vmem>>, vector<2x32xf32>
    tpu.vector_store %arg8[%c0_68, %c0_69], %127 {strides = array<i32>} : memref<2x32xf32, #tpu.memory_space<vmem>>, vector<2x32xf32>,
    return
  }
}

</mosaic_0001>

<bundles_post_ra>
// kernel: tpu_custom_call.1
= control target key start
LH: loop header
LB: loop body
LE: loop exit
PB: predicated region body
PF: predicated region fallthrough
CT: control target
= control target key end

     0   :  { %13 = vsyncpa [#allocation3], 0  ;;  %s1152_s0 = inlined_call_operand.hbm [shape: f32[3,2,8,8], index: 0, kind: input, shape index: {}]   ;;  %s1153_s1 = inlined_call_operand.hbm [shape: f32[16,20], index: 1, kind: input, shape index: {}]   ;;  %s1154_s2 = inlined_call_operand.vmem [shape: f32[20,32], index: 2, kind: input, shape index: {}]   ;;  %s1155_s3 = inlined_call_operand.vmem [shape: f32[2,2,8,1], index: 3, kind: input, shape index: {}]   ;;  %s1156_s4 = inlined_call_operand.hbm [shape: f32[6,32,32], index: 4, kind: input, shape index: {}]   ;;  %s1157_s5 = inlined_call_operand.hbm [shape: f32[3,32,96], index: 5, kind: input, shape index: {}]   ;;  %s1158_s6 = inlined_call_operand.vmem [shape: f32[8,32], index: 6, kind: input, shape index: {}]   ;;  %s1159_s7 = inlined_call_operand.vmem [shape: f32[2,96], index: 7, kind: input, shape index: {}]   ;;  %s1160_s8 = inlined_call_operand.hbm [shape: f32[2,32], index: 8, kind: output, shape index: {}]  }
   0x1   :  { %14 = vsyncpa [#allocation6], 0 }
   0x2   :  { %15 = vsyncpa [#allocation9], 0 }
   0x3   :  { %16 = vsyncpa [#allocation4], 0  ;;  %s34_s29 = sshll.u32 %s1153_s1, 4  ;;  %s993_s30 = smov [#allocation5]   ;;  %s35_s29 = int_to_ptr.hbm [resolvable:$true] %s34_s29 }
   0x4   :  { %s36_s9 = sshll.u32 %s993_s30, 4  ;;  %s21_s12 = sshll.u32 %s1152_s0, 4  ;;  %s37_s9 = int_to_ptr.vmem [resolvable:$true] %s36_s9  ;;  %s22_s12 = int_to_ptr.hbm [resolvable:$true] %s21_s12 }
   0x5   :  { %s994_s13 = smov 128   ;;  %s995_s14 = smov 8  }
   0x6   :  { %42 = dma.hbm_to_vmem [thread:$0]  %s35_s29, 256, %s37_s9, [#allocation6], %s994_s13, %s994_s13, %s995_s14  }
   0x7   :  { %s996_s15 = smov [#allocation2]   ;;  %s51_s19 = sshll.u32 %s1156_s4, 4  ;;  %s52_s19 = int_to_ptr.hbm [resolvable:$true] %s51_s19 }
   0x8   :  { %s23_s16 = sshll.u32 %s996_s15, 4  ;;  %s64_s21 = sshll.u32 %s1157_s5, 4  ;;  %s24_s16 = int_to_ptr.vmem [resolvable:$true] %s23_s16  ;;  %s65_s21 = int_to_ptr.hbm [resolvable:$true] %s64_s21 }
   0x9   :  { %29 = dma.hbm_to_vmem [thread:$0]  %s22_s12, 768, %s24_s16, [#allocation3], %s994_s13, %s994_s13, %s995_s14  }
   0xa   :  { %s997_s22 = smov [#allocation7]   ;;  %s998_s0 = smov [#allocation8]  }
   0xb   :  { %s53_s23 = sshll.u32 %s997_s22, 4  ;;  %s66_s24 = sshll.u32 %s998_s0, 4  ;;  %s54_s23 = int_to_ptr.vmem [resolvable:$true] %s53_s23  ;;  %s67_s24 = int_to_ptr.vmem [resolvable:$true] %s66_s24 }
   0xc   :  { %59 = dma.hbm_to_vmem [thread:$0]  %s52_s19, 3072, %s54_s23, [#allocation6], %s994_s13, %s994_s13, %s995_s14  }
   0xd   :  { %72 = dma.hbm_to_vmem [thread:$0]  %s65_s21, 1536, %s67_s24, [#allocation9], %s994_s13, %s994_s13, %s995_s14  }
   0xe   :  { %985 = dma.done.wait [#allocation3], 768  }
   0xf   :  { %986 = vsyncadd [#allocation3], 4294966528 }
  0x10   :  { %987 = dma.done.wait [#allocation6], 3328  }
  0x11   :  { %988 = vsyncadd [#allocation6], 4294963968 }
  0x12   :  { %989 = dma.done.wait [#allocation9], 1536  }
  0x13   :  { %990 = vsyncadd [#allocation9], 4294965760  ;;  %vm163_vm0 = vcmask 1043456   ;;  %v155_v0 = vld [vmem:[%s1154_s2 + $0x10] sm:$0xf]  ;;  %v154_v1 = vld [vmem:[%s1154_s2 + $0x8] sm:$0xff] }
  0x14   :  { %803 = vmatpush.msk.msra.mxu0 %vm163_vm0, %v155_v0  ;;  %v153_v2 = vld [vmem:[%s1154_s2] sm:$0xff]  ;;  %v96_v3 = vld [vmem:[#allocation7 + $0x18] sm:$0xff]  ;;  %v95_v5 = vld [vmem:[#allocation7 + $0x10] sm:$0xff]  ;;  %vm156_vm1 = vcmask 162816   ;;  %vm191_vm2 = vcmask 261120   ;;  %s999_s2 = smov 32  }
  0x15   :  { %210 = vmatpush.msra.mxu1 %v96_v3  ;;  %v101_v4 = vld [vmem:[#allocation7 + $0x38] sm:$0xff]  ;;  %v100_v6 = vld [vmem:[#allocation7 + $0x30] sm:$0xff]  ;;  %v94_v8 = vld [vmem:[#allocation7 + $0x8] sm:$0xff]  ;;  %vm245_vm3 = vcmask 64512   ;;  %s1000_s10 = smov 64   ;;  %vm596_vm12 = vcmask 1041409  }
  0x16   :  { %181 = vmatpush.msra.mxu0 %v154_v1  ;;  %v151_v7 = vld [vmem:[#allocation5] sm:$0xff]  ;;  %234 = vmatpush.msra.mxu2 %v101_v4  ;;  %v99_v9 = vld [vmem:[#allocation7 + $0x28] sm:$0xff]  ;;  %v152_v10 = vld [vmem:[#allocation5 + $0x8] sm:$0xff]  ;;  %s789_s21 = sshll.u32 %s1160_s8, 4  ;;  %s790_s21 = int_to_ptr.hbm [resolvable:$true] %s789_s21 }
  0x17   :  { %211 = vmatpush.msra.mxu1 %v95_v5  ;;  %v93_v11 = vld [vmem:[#allocation7] sm:$0xff]  ;;  %v125_v20 = vld [vmem:[#allocation8 + $0x18] sm:$0xff]  ;;  %v124_v21 = vld [vmem:[#allocation8 + $0x10] sm:$0xff] }
  0x18   :  { %182 = vmatpush.msra.mxu0 %v153_v2  ;;  %235 = vmatpush.msra.mxu2 %v100_v6  ;;  %v98_v12 = vld [vmem:[#allocation7 + $0x20] sm:$0xff]  ;;  %v139_v26 = vld [vmem:[#allocation2 + $0x8] sm:$0xff]  ;;  %v135_v28 = vld [vmem:[#allocation8 + $0x58] sm:$0xff] }
  0x19   :  { %804 = vmatmul.msk.f32.vlgmr.msra.gmra.mxu0 %vm156_vm1, %v151_v7  ;;  %212 = vmatpush.msra.mxu1 %v94_v8  ;;  %v1082_v15 = vld [vmem:[%s1158_s6] sm:$0xff]  ;;  %v134_v29 = vld [vmem:[#allocation8 + $0x50] sm:$0xff]  ;;  %v133_v31 = vld [vmem:[#allocation8 + $0x48] sm:$0xff] }
  0x1a   :  { %236 = vmatpush.msra.mxu2 %v99_v9  ;;  %v190_v16 = vperm.slane %v1082_v15, 0  ;;  %v138_v19 = vld [vmem:[#allocation2] sm:$0xff]  ;;  %v221_v22 = vperm.slane %v1082_v15, 1  ;;  %v142_v33 = vld [vmem:[#allocation2 + $0x18] sm:$0xff]  ;;  %v141_v34 = vld [vmem:[#allocation2 + $0x10] sm:$0xff]  ;;  %v292_v42 = vperm.slane %v1082_v15, 2 }
  0x1b   :  { %213 = vmatpush.msra.mxu1 %v93_v11  ;;  %v132_v35 = vld [vmem:[#allocation8 + $0x40] sm:$0xff]  ;;  %v123_v36 = vld [vmem:[#allocation8 + $0x8] sm:$0xff]  ;;  %v130_v38 = vld [vmem:[#allocation8 + $0x38] sm:$0xff]  ;;  %v341_v47 = vperm.slane %v1082_v15, 3 }
  0x1c   :  { %237 = vmatpush.msra.mxu2 %v98_v12  ;;  %v122_v37 = vld [vmem:[#allocation8] sm:$0xff]  ;;  %v129_v39 = vld [vmem:[#allocation8 + $0x30] sm:$0xff]  ;;  %v128_v40 = vld [vmem:[#allocation8 + $0x28] sm:$0xff] }
  0x1d   :  { %362 = vmatpush.msrb.mxu1 %v130_v38  ;;  %v127_v41 = vld [vmem:[#allocation8 + $0x20] sm:$0xff] }
  0x1e   :  { %391 = vmatpush.msrb.mxu2 %v125_v20  ;;  %v137_v50 = vld [vmem:[%s1159_s7] sm:$0x3]  ;;  %s1001_s7 = smov 96  }
  0x1f   :  { %363 = vmatpush.msrb.mxu1 %v129_v39  ;;  %v405_v52 = vperm.slane %v137_v50, 1  ;;  %v402_v59 = vperm.slane %v137_v50, 0 }
  0x20   :  { %392 = vmatpush.msrb.mxu2 %v124_v21 }
  0x21   :  { %805 = vmatmul.msk.f32.gmra.mxu0 %vm156_vm1, %v152_v10  ;;  %364 = vmatpush.msrb.mxu1 %v128_v40 }
  0x22   :  { %393 = vmatpush.msrb.mxu2 %v123_v36 }
  0x23   :  { %365 = vmatpush.msrb.mxu1 %v127_v41 }
  0x24   :  { %394 = vmatpush.msrb.mxu2 %v122_v37 }
  0x96   :  { %v184_v13 = vpop.f32.mrf.mxu0 }
  0x97   :  { %493 = vrot.lane.b32.xlu2 %v184_v13, %s999_s2  ;;  %806 = vmatmul.msk.f32.vlgmr.msra.gmra.mxu1 %vm191_vm2, %v184_v13 }
  0x98   :  { %808 = vmatmul.msk.f32.vlgmr.msra.gmra.mxu2 %vm191_vm2, %v184_v13 }
  0x9e   :  { %v1073_v14 = vpop.f32.mrf.mxu0 }
  0x9f   :  { %807 = vmatmul.msk.f32.gmra.mxu1 %vm191_vm2, %v1073_v14 }
  0xa0   :  { %809 = vmatmul.msk.f32.gmra.mxu2 %vm191_vm2, %v1073_v14 }
 0x114   :  { %v215_v17 = vpop.f32.mrf.mxu1 }
 0x115   :  { %v216_v18 = vadd.f32 %v215_v17, %v190_v16 }
 0x117   :  { %264 = vmatpush.msra.mxu3 %v216_v18 }
 0x118   :  { %810 = vmatmul.msk.f32.vlgmr.msra.gmra.mxu3 %vm245_vm3, %v138_v19 }
 0x11b   :  { %v239_v23 = vpop.f32.mrf.mxu2 }
 0x11c   :  { %v218_v24 = vpop.f32.mrf.mxu1  ;;  %v240_v27 = vadd.f32 %v239_v23, %v221_v22 }
 0x11d   :  { %v219_v25 = vadd.f32 %v218_v24, %v190_v16 }
 0x11f   :  { %287 = vmatpush.msrb.mxu3 %v219_v25 }
 0x120   :  { %811 = vmatmul.msk.f32.vlgmr.msrb.gmra.mxu3 %vm245_vm3, %v139_v26 }
 0x121   :  { %313 = vmatpush.msra.mxu3 %v240_v27 }
 0x123   :  { %418 = vmatpush.msrb.mxu3 %v135_v28  ;;  %v242_v30 = vpop.f32.mrf.mxu2 }
 0x124   :  { %v243_v32 = vadd.f32 %v242_v30, %v221_v22 }
 0x125   :  { %419 = vmatpush.msrb.mxu3 %v134_v29 }
 0x126   :  { %336 = vmatpush.msrb.mxu0 %v243_v32 }
 0x127   :  { %420 = vmatpush.msrb.mxu3 %v133_v31  ;;  %813 = vmatmul.msk.f32.vlgmr.msrb.gmra.mxu0 %vm245_vm3, %v142_v33 }
 0x128   :  { %812 = vmatmul.msk.f32.vlgmr.msra.gmra.mxu3 %vm245_vm3, %v141_v34 }
 0x129   :  { %421 = vmatpush.msrb.mxu3 %v132_v35 }
 0x130   :  { %818 = vmatmul.msk.f32.vlgmr.msrb.gmra.mxu3 %vm191_vm2, %v184_v13 }
 0x138   :  { %819 = vmatmul.msk.f32.gmra.mxu3 %vm191_vm2, %v1073_v14 }
 0x19b   :  { %v266_v43 = vpop.f32.mrf.mxu3 }
 0x19c   :  { %v293_v44 = vadd.f32 %v292_v42, %v266_v43 }
 0x19e   :  { %816 = vmatmul.msk.f32.vlgmr.msrb.gmra.mxu2 %vm191_vm2, %v293_v44 }
 0x1a3   :  { %v289_v45 = vpop.f32.mrf.mxu3 }
 0x1a4   :  { %v294_v46 = vadd.f32 %v292_v42, %v289_v45  ;;  %v338_v51 = vpop.f32.mrf.mxu0  ;;  %v494_v42 = vpop.permute.xlu2 %493 }
 0x1a5   :  { %v343_v53 = vadd.f32 %v341_v47, %v338_v51 }
 0x1a6   :  { %817 = vmatmul.msk.f32.gmra.mxu2 %vm191_vm2, %v294_v46 }
 0x1ab   :  { %v315_v48 = vpop.f32.mrf.mxu3 }
 0x1ac   :  { %v342_v49 = vadd.f32 %v341_v47, %v315_v48 }
 0x1ae   :  { %814 = vmatmul.msk.f32.vlgmr.msrb.gmra.mxu1 %vm191_vm2, %v342_v49 }
 0x1b3   :  { %v423_v54 = vpop.f32.mrf.mxu3 }
 0x1b4   :  { %v424_v55 = vadd.f32 %v423_v54, %v405_v52  ;;  %v144_v54 = vld [vmem:[#allocation2 + $0x20] sm:$0xff] }
 0x1b6   :  { %471 = vrot.lane.b32.xlu0 %v424_v55, %s1000_s10  ;;  %815 = vmatmul.msk.f32.gmra.mxu1 %vm191_vm2, %v343_v53 }
 0x1bb   :  { %v426_v56 = vpop.f32.mrf.mxu3 }
 0x1bc   :  { %v427_v57 = vadd.f32 %v426_v56, %v405_v52  ;;  %v1002_v56 = vmov 0  }
 0x1bd   :  { %842 = vset.pattern.permute.xlu1 %v1002_v56  ;;  %843 = vset.pattern.permute.xlu2 %v1002_v56 }
 0x1be   :  { %473 = vrot.lane.b32.xlu0 %v427_v57, %s1000_s10 }
 0x1bf   :  { %844 = vset.pattern.permute.xlu0 %v1002_v56 }
 0x1c6   :  { %495 = vrot.lane.b32.xlu0 %v1073_v14, %s999_s2 }
 0x221   :  { %v396_v58 = vpop.f32.mrf.mxu2 }
 0x228   :  { %v472_v20 = vpop.permute.xlu0 %471 }
 0x229   :  { %v399_v1 = vpop.f32.mrf.mxu2 }
 0x22b   :  { %v367_v60 = vpop.f32.mrf.mxu1 }
 0x22c   :  { %v397_v61 = vadd.f32 %v396_v58, %v367_v60  ;;  %v147_v58 = vld [vmem:[%s1155_s3 + $0x8] sm:$0xff] }
 0x22e   :  { %v403_v62 = vadd.f32 %v402_v59, %v397_v61  ;;  %v111_v61 = vld [vmem:[#allocation7 + $0x78] sm:$0xff] }
 0x22f   :  { %639 = vmatpush.msra.mxu2 %v111_v61 }
 0x230   :  { %v429_v63 = vadd.f32 %v424_v55, %v403_v62  ;;  %v474_v33 = vpop.permute.xlu0 %473 }
 0x232   :  { %v820_v0 = vmul.f32 -1.442695, %v429_v63  ;;  %v109_v63 = vld [vmem:[#allocation7 + $0x68] sm:$0xff] }
 0x233   :  { %v370_v2 = vpop.f32.mrf.mxu1 }
 0x234   :  { %845 = vpow2.f32 %v820_v0  ;;  %v400_v3 = vadd.f32 %v399_v1, %v370_v2  ;;  %v108_v0 = vld [vmem:[#allocation7 + $0x60] sm:$0xff]  ;;  %v106_v2 = vld [vmem:[#allocation7 + $0x58] sm:$0xff] }
 0x235   :  { %612 = vmatpush.msra.mxu1 %v106_v2 }
 0x236   :  { %v404_v4 = vadd.f32 %v402_v59, %v400_v3  ;;  %v145_v59 = vld [vmem:[#allocation2 + $0x28] sm:$0xff]  ;;  %v121_v3 = vld [vmem:[#allocation7 + $0xb8] sm:$0xff] }
 0x237   :  { %745 = vmatpush.msra.mxu3 %v121_v3 }
 0x238   :  { %v430_v5 = vadd.f32 %v427_v57, %v404_v4  ;;  %v496_v49 = vpop.permute.xlu0 %495  ;;  %v146_v57 = vld [vmem:[%s1155_s3] sm:$0xff] }
 0x23a   :  { %v846_v6 = vpop.eup %845  ;;  %v821_v7 = vmul.f32 -1.442695, %v430_v5  ;;  %v120_v5 = vld [vmem:[#allocation7 + $0xb0] sm:$0xff] }
 0x23b   :  { %v437_v8 = vadd.f32 1.0, %v846_v6  ;;  %v104_v6 = vld [vmem:[#allocation7 + $0x48] sm:$0xff]  ;;  %746 = vmatpush.msra.mxu3 %v120_v5 }
 0x23c   :  { %847 = vpow2.f32 %v821_v7  ;;  %v119_v7 = vld [vmem:[#allocation7 + $0xa8] sm:$0xff] }
 0x23d   :  { %849 = vrcp.f32 %v437_v8  ;;  %v450_v14 = vand.u32 2147483648, %v437_v8  ;;  %v448_v17 = vand.u32 2147483647, %v437_v8  ;;  %vm444_vm5 = vweird.f32 %v437_v8  ;;  %747 = vmatpush.msra.mxu3 %v119_v7 }
 0x23f   :  { %v451_v21 = vor.u32 1.1754944e-38, %v450_v14  ;;  %vm449_vm7 = vcmp.eq.f32.partialorder %v448_v17, 8.507059e+37 }
 0x242   :  { %v848_v9 = vpop.eup %847 }
 0x243   :  { %v850_v10 = vpop.eup %849  ;;  %v438_v11 = vadd.f32 1.0, %v848_v9  ;;  %v118_v9 = vld [vmem:[#allocation7 + $0xa0] sm:$0xff] }
 0x244   :  { %v440_v12 = vmul.f32 %v850_v10, %v437_v8  ;;  %vm445_vm4 = vweird.f32 %v850_v10  ;;  %v103_v8 = vld [vmem:[#allocation7 + $0x40] sm:$0xff]  ;;  %748 = vmatpush.msra.mxu3 %v118_v9 }
 0x245   :  { %851 = vrcp.f32 %v438_v11  ;;  %vm446_vm6 = vmor %vm444_vm5, %vm445_vm4  ;;  %v465_v27 = vand.u32 2147483648, %v438_v11  ;;  %v463_v29 = vand.u32 2147483647, %v438_v11  ;;  %vm459_vm9 = vweird.f32 %v438_v11 }
 0x246   :  { %v441_v13 = vsub.f32 1.0, %v440_v12 }
 0x247   :  { %v466_v31 = vor.u32 1.1754944e-38, %v465_v27  ;;  %vm464_vm11 = vcmp.eq.f32.partialorder %v463_v29, 8.507059e+37 }
 0x248   :  { %v442_v16 = vmul.f32 %v850_v10, %v441_v13 }
 0x24a   :  { %v443_v18 = vadd.f32 %v850_v10, %v442_v16 }
 0x24b   :  { %v852_v19 = vpop.eup %851 }
 0x24c   :  { %v455_v22 = vmul.f32 %v852_v19, %v438_v11  ;;  %v447_v23 = vsel %vm446_vm6, %v850_v10, %v443_v18  ;;  %vm460_vm8 = vweird.f32 %v852_v19  ;;  %vm780_vm6 = vcmask 254976  }
 0x24d   :  { %v452_v24 = vsel %vm449_vm7, %v451_v21, %v447_v23  ;;  %vm461_vm10 = vmor %vm459_vm9, %vm460_vm8 }
 0x24e   :  { %v456_v25 = vsub.f32 1.0, %v455_v22  ;;  %v477_v26 = vmul.f32 %v472_v20, %v452_v24  ;;  %v491_v43 = vsub.f32 1.0, %v452_v24 }
 0x250   :  { %v457_v28 = vmul.f32 %v852_v19, %v456_v25  ;;  %481 = vrot.lane.b32.xlu1 %v477_v26, %s1000_s10  ;;  %v499_v45 = vmul.f32 %v494_v42, %v491_v43 }
 0x252   :  { %v458_v30 = vadd.f32 %v852_v19, %v457_v28 }
 0x254   :  { %v462_v32 = vsel %vm461_vm10, %v852_v19, %v458_v30 }
 0x255   :  { %v467_v34 = vsel %vm464_vm11, %v466_v31, %v462_v32  ;;  %v593_v32 = vperm.slane %v1082_v15, 4 }
 0x256   :  { %v478_v35 = vmul.f32 %v474_v33, %v467_v34  ;;  %v492_v48 = vsub.f32 1.0, %v467_v34  ;;  %v620_v33 = vperm.slane %v1082_v15, 5 }
 0x258   :  { %483 = vrot.lane.b32.xlu1 %v478_v35, %s1000_s10  ;;  %v500_v51 = vmul.f32 %v496_v49, %v492_v48 }
 0x2c2   :  { %v482_v36 = vpop.permute.xlu1 %481 }
 0x2c3   :  { %v487_v37 = vadd.f32 %v482_v36, %v403_v62  ;;  %v110_v62 = vld [vmem:[#allocation7 + $0x70] sm:$0xff] }
 0x2c4   :  { %640 = vmatpush.msra.mxu2 %v110_v62 }
 0x2c5   :  { %853 = vtanh.f32 %v487_v37 }
 0x2c6   :  { %641 = vmatpush.msra.mxu2 %v109_v63 }
 0x2c8   :  { %642 = vmatpush.msra.mxu2 %v108_v0 }
 0x2ca   :  { %v484_v38 = vpop.permute.xlu1 %483 }
 0x2cb   :  { %v854_v39 = vpop.eup %853  ;;  %v488_v40 = vadd.f32 %v484_v38, %v404_v4  ;;  %v105_v4 = vld [vmem:[#allocation7 + $0x50] sm:$0xff] }
 0x2cc   :  { %503 = vrot.lane.b32.xlu2 %v854_v39, %s1001_s7  ;;  %613 = vmatpush.msra.mxu1 %v105_v4 }
 0x2cd   :  { %855 = vtanh.f32 %v488_v40 }
 0x2ce   :  { %614 = vmatpush.msra.mxu1 %v104_v6 }
 0x2d0   :  { %615 = vmatpush.msra.mxu1 %v103_v8 }
 0x2d3   :  { %v856_v41 = vpop.eup %855 }
 0x2d4   :  { %505 = vrot.lane.b32.xlu1 %v856_v41, %s1001_s7 }
 0x2dc   :  { %569 = vperm.xlu1 %842, %v146_v57  }
 0x326   :  { %v504_v44 = vpop.permute.xlu2 %503 }
 0x327   :  { %v509_v46 = vmul.f32 %v504_v44, %v452_v24 }
 0x329   :  { %v511_v47 = vadd.f32 %v509_v46, %v499_v45 }
 0x32b   :  { %514 = vrot.lane.b32.xlu2 %v511_v47, %s1001_s7 }
 0x333   :  { %574 = vperm.xlu2 %843, %v147_v58  }
 0x346   :  { %v506_v50 = vpop.permute.xlu1 %505 }
 0x347   :  { %v510_v52 = vmul.f32 %v506_v50, %v467_v34 }
 0x349   :  { %v512_v53 = vadd.f32 %v510_v52, %v500_v51 }
 0x34b   :  { %541 = vrot.lane.b32.xlu0 %v512_v53, %s1001_s7 }
 0x34e   :  { %v570_v10 = vpop.permute.xlu1 %569 }
 0x385   :  { %v515_v55 = vpop.permute.xlu2 %514 }
 0x386   :  { %535 = vmatpush.msra.mxu0 %v515_v55 }
 0x387   :  { %822 = vmatmul.msk.f32.vlgmr.msra.gmra.mxu0 %vm245_vm3, %v144_v54 }
 0x38d   :  { %v575_v16 = vpop.permute.xlu2 %574 }
 0x3bd   :  { %v542_v60 = vpop.permute.xlu0 %541 }
 0x3be   :  { %562 = vmatpush.msrb.mxu0 %v542_v60 }
 0x3bf   :  { %823 = vmatmul.msk.f32.vlgmr.msrb.gmra.mxu0 %vm245_vm3, %v145_v59  ;;  %v696_v59 = vperm.slane %v1082_v15, 6 }
 0x404   :  { %v1116_v1 = vpop.f32.mrf.mxu0 }
 0x405   :  { %825 = vmatmul.msk.f32.vlgmr.msra.gmra.mxu2 %vm191_vm2, %v1116_v1  ;;  %v577_v11 = vmul.f32 %v570_v10, %v1116_v1 }
 0x407   :  { %v579_v12 = vsel %vm191_vm2, %v577_v11, 0.0 }
 0x408   :  { %v580_v13 = vrot.slane %v579_v12, 4 }
 0x40a   :  { %v581_v14 = vadd.f32 %v580_v13, %v579_v12  ;;  %v801_v12 = vld [vmem:[%s1155_s3 + $0x10] sm:$0xff] }
 0x40c   :  { %v582_v19 = vrot.slane %v581_v14, 2 }
 0x40e   :  { %v583_v22 = vadd.f32 %v582_v19, %v581_v14 }
 0x410   :  { %v584_v25 = vrot.slane %v583_v22, 1 }
 0x412   :  { %v585_v28 = vadd.f32 %v584_v25, %v583_v22  ;;  %v114_v22 = vld [vmem:[#allocation7 + $0x88] sm:$0xff] }
 0x43c   :  { %v1122_v17 = vpop.f32.mrf.mxu0 }
 0x43d   :  { %v578_v18 = vmul.f32 %v575_v16, %v1122_v17  ;;  %826 = vmatmul.msk.f32.gmra.mxu2 %vm191_vm2, %v1122_v17  ;;  %v802_v16 = vld [vmem:[%s1155_s3 + $0x18] sm:$0xff]  ;;  %s1003_s3 = smov [#allocation10]  }
 0x43e   :  { %s787_s19 = sshll.u32 %s1003_s3, 4  ;;  %s788_s19 = int_to_ptr.vmem [resolvable:$true] %s787_s19 }
 0x43f   :  { %v586_v20 = vsel %vm191_vm2, %v578_v18, 0.0 }
 0x440   :  { %v587_v21 = vrot.slane %v586_v20, 4 }
 0x442   :  { %v588_v23 = vadd.f32 %v587_v21, %v586_v20  ;;  %v116_v20 = vld [vmem:[#allocation7 + $0x98] sm:$0xff]  ;;  %v115_v21 = vld [vmem:[#allocation7 + $0x90] sm:$0xff] }
 0x443   :  { %770 = vmatpush.msra.mxu0 %v116_v20 }
 0x444   :  { %v589_v24 = vrot.slane %v588_v23, 2 }
 0x445   :  { %771 = vmatpush.msra.mxu0 %v115_v21 }
 0x446   :  { %v590_v26 = vadd.f32 %v589_v24, %v588_v23  ;;  %v113_v23 = vld [vmem:[#allocation7 + $0x80] sm:$0xff] }
 0x447   :  { %772 = vmatpush.msra.mxu0 %v114_v22 }
 0x448   :  { %v591_v27 = vrot.slane %v590_v26, 1 }
 0x449   :  { %773 = vmatpush.msra.mxu0 %v113_v23 }
 0x44a   :  { %v592_v29 = vadd.f32 %v591_v27, %v590_v26 }
 0x44c   :  { %v597_v30 = vsel %vm596_vm12, %v592_v29, %v585_v28 }
 0x44d   :  { %824 = vmatmul.msk.f32.vlgmr.msra.gmra.mxu1 %vm191_vm2, %v597_v30  ;;  %829 = vmatmul.msk.f32.vlgmr.msra.gmra.mxu3 %vm191_vm2, %v597_v30 }
 0x488   :  { %v644_v31 = vpop.f32.mrf.mxu2 }
 0x489   :  { %v645_v37 = vadd.f32 %v644_v31, %v620_v33 }
 0x4c0   :  { %v647_v36 = vpop.f32.mrf.mxu2 }
 0x4c1   :  { %v648_v40 = vadd.f32 %v647_v36, %v620_v33 }
 0x4ca   :  { %v617_v34 = vpop.f32.mrf.mxu1 }
 0x4cb   :  { %v618_v35 = vadd.f32 %v617_v34, %v593_v32 }
 0x4cd   :  { %v651_v38 = vrot.slane %v618_v35, 1  ;;  %v652_v39 = vperm.slane %v618_v35, 0 }
 0x4cf   :  { %v653_v41 = vperm.slane %v651_v38, 0  ;;  %v656_v42 = vadd.f32 %v652_v39, %v645_v37 }
 0x4d1   :  { %v657_v43 = vadd.f32 %v653_v41, %v648_v40  ;;  %v827_v44 = vmul.f32 -1.442695, %v656_v42  ;;  %v778_v42 = vperm.slane %v1082_v15, 7 }
 0x4d3   :  { %857 = vpow2.f32 %v827_v44  ;;  %v828_v45 = vmul.f32 -1.442695, %v657_v43  ;;  %v750_v43 = vpop.f32.mrf.mxu3 }
 0x4d5   :  { %859 = vpow2.f32 %v828_v45 }
 0x4d9   :  { %v858_v46 = vpop.eup %857 }
 0x4da   :  { %v664_v47 = vadd.f32 1.0, %v858_v46 }
 0x4db   :  { %v860_v48 = vpop.eup %859 }
 0x4dc   :  { %v665_v49 = vadd.f32 1.0, %v860_v48  ;;  %861 = vrcp.f32 %v664_v47  ;;  %v677_v55 = vand.u32 2147483648, %v664_v47  ;;  %v675_v57 = vand.u32 2147483647, %v664_v47 }
 0x4dd   :  { %vm671_vm14 = vweird.f32 %v664_v47 }
 0x4de   :  { %863 = vrcp.f32 %v665_v49  ;;  %v692_v60 = vand.u32 2147483648, %v665_v49  ;;  %v690_v63 = vand.u32 2147483647, %v665_v49  ;;  %v678_v0 = vor.u32 1.1754944e-38, %v677_v55 }
 0x4df   :  { %vm676_vm1 = vcmp.eq.f32.partialorder %v675_v57, 8.507059e+37  ;;  %vm686_vm3 = vweird.f32 %v665_v49 }
 0x4e0   :  { %v693_v5 = vor.u32 1.1754944e-38, %v692_v60  ;;  %vm691_vm5 = vcmp.eq.f32.partialorder %v690_v63, 8.507059e+37 }
 0x4e2   :  { %v862_v50 = vpop.eup %861 }
 0x4e3   :  { %v667_v51 = vmul.f32 %v862_v50, %v664_v47  ;;  %vm672_vm13 = vweird.f32 %v862_v50 }
 0x4e4   :  { %v864_v52 = vpop.eup %863  ;;  %vm673_vm0 = vmor %vm671_vm14, %vm672_vm13 }
 0x4e5   :  { %v668_v53 = vsub.f32 1.0, %v667_v51  ;;  %v682_v54 = vmul.f32 %v864_v52, %v665_v49  ;;  %vm687_vm15 = vweird.f32 %v864_v52 }
 0x4e6   :  { %vm688_vm4 = vmor %vm686_vm3, %vm687_vm15 }
 0x4e7   :  { %v669_v56 = vmul.f32 %v862_v50, %v668_v53  ;;  %v683_v58 = vsub.f32 1.0, %v682_v54 }
 0x4e9   :  { %v670_v61 = vadd.f32 %v862_v50, %v669_v56  ;;  %v684_v62 = vmul.f32 %v864_v52, %v683_v58 }
 0x4eb   :  { %v674_v2 = vsel %vm673_vm0, %v862_v50, %v670_v61  ;;  %v685_v3 = vadd.f32 %v864_v52, %v684_v62 }
 0x4ec   :  { %v679_v4 = vsel %vm676_vm1, %v678_v0, %v674_v2 }
 0x4ed   :  { %v697_v6 = vmul.f32 %v696_v59, %v679_v4  ;;  %v689_v7 = vsel %vm688_vm4, %v864_v52, %v685_v3 }
 0x4ee   :  { %v694_v8 = vsel %vm691_vm5, %v693_v5, %v689_v7 }
 0x4ef   :  { %v699_v9 = vsel %vm191_vm2, %v697_v6, 0.0  ;;  %v698_v10 = vmul.f32 %v696_v59, %v694_v8 }
 0x4f0   :  { %700 = vadd.xlane.f32.xlu0 %v699_v9 }
 0x4f1   :  { %v702_v11 = vsel %vm191_vm2, %v698_v10, 0.0 }
 0x4f2   :  { %703 = vadd.xlane.f32.xlu1 %v702_v11 }
 0x563   :  { %v701_v13 = vpop.xlane.xlu0 %700 }
 0x564   :  { %v705_v14 = vmul.f32 %v801_v12, %v701_v13 }
 0x565   :  { %v704_v18 = vpop.xlane.xlu1 %703 }
 0x566   :  { %709 = vperm.xlu2 %843, %v705_v14   ;;  %v706_v19 = vmul.f32 %v802_v16, %v704_v18 }
 0x56e   :  { %714 = vperm.xlu2 %843, %v706_v19  }
 0x5c0   :  { %v710_v24 = vpop.permute.xlu2 %709 }
 0x5c1   :  { %v717_v25 = vmul.f32 %v710_v24, %v1116_v1 }
 0x5c3   :  { %v719_v26 = vsel %vm191_vm2, %v717_v25, 0.0 }
 0x5c4   :  { %v720_v27 = vrot.slane %v719_v26, 4 }
 0x5c6   :  { %v721_v28 = vadd.f32 %v720_v27, %v719_v26 }
 0x5c8   :  { %v715_v29 = vpop.permute.xlu2 %714  ;;  %v722_v31 = vrot.slane %v721_v28, 2 }
 0x5c9   :  { %v718_v30 = vmul.f32 %v715_v29, %v1122_v17 }
 0x5ca   :  { %v723_v34 = vadd.f32 %v722_v31, %v721_v28 }
 0x5cb   :  { %v726_v32 = vsel %vm191_vm2, %v718_v30, 0.0 }
 0x5cc   :  { %v727_v33 = vrot.slane %v726_v32, 4  ;;  %v724_v37 = vrot.slane %v723_v34, 1 }
 0x5ce   :  { %v728_v35 = vadd.f32 %v727_v33, %v726_v32  ;;  %v725_v40 = vadd.f32 %v724_v37, %v723_v34 }
 0x5d0   :  { %v729_v36 = vrot.slane %v728_v35, 2 }
 0x5d2   :  { %v730_v38 = vadd.f32 %v729_v36, %v728_v35 }
 0x5d4   :  { %v731_v39 = vrot.slane %v730_v38, 1 }
 0x5d6   :  { %v732_v41 = vadd.f32 %v731_v39, %v730_v38 }
 0x5d8   :  { %v755_v1 = vsel %vm596_vm12, %v732_v41, %v725_v40 }
 0x5d9   :  { %830 = vmatmul.msk.f32.vlgmr.msra.gmra.mxu0 %vm191_vm2, %v755_v1 }
 0x656   :  { %v775_v17 = vpop.f32.mrf.mxu0 }
 0x657   :  { %v776_v44 = vadd.f32 %v775_v17, %v750_v43 }
 0x659   :  { %v779_v45 = vadd.f32 %v778_v42, %v776_v44 }
 0x65b   :  { %781 = vst.msk [vmem:[#allocation10] sm:$0x3] %vm780_vm6, %v779_v45 }
 0x65c   :  { %792 = dma.vmem_to_hbm [thread:$0]  %s788_s19, 32, %s790_s21, [#allocation4]  }
 0x65d   :  { %991 = dma.done.wait [#allocation4], 32  }
 0x65e   :  { %992 = vsyncadd [#allocation4], 4294967264 }
 0x65f   :  { %797 = vsyncpa [#allocation3], 1 }
 0x660   :  { %798 = vsyncpa [#allocation6], 1 }
 0x661   :  { %799 = vsyncpa [#allocation9], 1 }
 0x662   :  { %800 = vsyncpa [#allocation4], 1 }

</bundles_post_ra>
